<compile_context>
chip_gen: v6e
topology: v6e:2x2x1
jax: 0.10.0
libtpu: 0.0.40
codegen_flags: <defaults>
</compile_context>

<pallas_src>
import jax
import jax.numpy as jnp
from jax import lax
from jax.experimental import pallas as pl
from jax.experimental.pallas import tpu as pltpu


def _mlp_kernel(x_ref, w0_ref, b0_ref, w1_ref, b1_ref, w2_ref, b2_ref, out_ref):
    """One batch tile, with `pack` batch rows packed into the lane dimension.

    x_ref  : (tile_b//pack, pack*F)  f32  (cast to bf16 in-kernel)
    w0_ref : (pack*F,  pack*H0)      bf16 (BatchNorm folded, block-diagonal)
    b0_ref : (1, pack*H0)            f32
    w1_ref : (pack*H0, pack*H1)      bf16 (block-diagonal)
    b1_ref : (1, pack*H1)            f32
    w2_ref : (pack*H1, pack)         bf16 (block-diagonal final projection)
    b2_ref : (1, 1)                  f32  (SMEM scalar)
    out_ref: (tile_b//pack, pack)    f32  sigmoid(logits), row-major == batch order
    """
    x = x_ref[...].astype(jnp.bfloat16)                       # in-kernel cast (VPU slack)

    # ---- Linear 0 (+ folded eval-mode BatchNorm) + ReLU (Dropout = identity) ----
    h = jnp.dot(x, w0_ref[...], preferred_element_type=jnp.float32)
    h = jnp.maximum(h + b0_ref[...], 0.0)

    # ---- Linear 1 + ReLU (Dropout = identity) ----
    h = jnp.dot(h.astype(jnp.bfloat16), w1_ref[...], preferred_element_type=jnp.float32)
    h = jnp.maximum(h + b1_ref[...], 0.0)

    # ---- Final Linear(out_features=1) + exact Sigmoid ----
    logit = jnp.dot(h.astype(jnp.bfloat16), w2_ref[...], preferred_element_type=jnp.float32)
    logit = logit + b2_ref[0, 0]
    out_ref[...] = 1.0 / (1.0 + jnp.exp(-logit))


def _round_up(a, m):
    return (a + m - 1) // m * m


def _block_diag(w, pack):
    """(fin, fout) -> (pack*fin, pack*fout) block-diagonal replication of w."""
    if pack == 1:
        return w
    fin, fout = w.shape
    eye = jnp.eye(pack, dtype=w.dtype)
    return jnp.einsum("pq,ij->piqj", eye, w).reshape(pack * fin, pack * fout)


def custom_model_forward(x, params, *, tile_b=2048):
    """x: (B, F) float32.  Returns (B,) float32 — matches `.reshape(-1)`."""
    B, F = x.shape
    H0 = params["w0"].shape[1]
    H1 = params["w1"].shape[1]

    # --- Fold eval-mode BatchNorm1d (running stats) exactly into the first Linear ---
    s = params["bn_gamma"] * lax.rsqrt(params["bn_var"] + 1e-5)                 # (1, F)
    w0_folded = params["w0"] * s.reshape(F, 1)                                  # (F, H0)
    b0_folded = params["b0"] + (params["bn_beta"] - params["bn_mean"] * s) @ params["w0"]

    # --- Batch packing factor: put `pack` batch rows side by side in the lane dim so
    #     each MXU pass computes `pack` rows (K = pack*F ~ 128 instead of 32). ---
    pack = max(1, min(8, 128 // F)) if F < 128 else 1

    # --- Pick the batch tile: large (amortize ~0.35us/step), aligned so the packed
    #     sublane dim is a multiple of 8, shrunk for small batches, and >= 2 grid
    #     steps when possible (feeds both v7x TensorCores via the parallel axis). ---
    row_align = 8 * pack
    if B > row_align:
        tile_b = min(tile_b, _round_up(max(B // 2, row_align), row_align))
    else:
        tile_b = row_align
    tile_b = _round_up(tile_b, row_align)

    num_tiles = pl.cdiv(B, tile_b)
    b_padded = num_tiles * tile_b
    if b_padded != B:
        # TODO(synk): at production sizes handle the ragged tail in-kernel instead of a
        # full-array pad (extra HBM pass); padded rows only reach discarded outputs.
        x = jnp.pad(x, ((0, b_padded - B), (0, 0)))

    # Free, contiguous row-major reshape: packed row r holds batch rows [r*pack, (r+1)*pack).
    x_packed = x.reshape(b_padded // pack, pack * F)          # stays f32; cast in-kernel

    # Block-diagonal weights (bf16 for the MXU) + lane-tiled biases (f32, exact add).
    w0_bd = _block_diag(w0_folded, pack).astype(jnp.bfloat16)       # (pack*F,  pack*H0)
    w1_bd = _block_diag(params["w1"], pack).astype(jnp.bfloat16)    # (pack*H0, pack*H1)
    w2_bd = _block_diag(params["w2"], pack).astype(jnp.bfloat16)    # (pack*H1, pack)
    b0_t = jnp.tile(b0_folded.astype(jnp.float32), (1, pack))       # (1, pack*H0)
    b1_t = jnp.tile(params["b1"].astype(jnp.float32), (1, pack))    # (1, pack*H1)
    b2 = params["b2"].reshape(1, 1).astype(jnp.float32)             # scalar -> SMEM

    rows = tile_b // pack                                           # multiple of 8

    def const_spec(shape):
        # Same block every grid step -> stays resident in VMEM (no re-DMA).
        return pl.BlockSpec(shape, lambda i: (0, 0))

    grid_spec = pltpu.PrefetchScalarGridSpec(
        num_scalar_prefetch=0,
        grid=(num_tiles,),
        in_specs=[
            pl.BlockSpec((rows, pack * F), lambda i: (i, 0)),        # stream packed x tiles
            const_spec((pack * F, pack * H0)),                       # w0 block-diag
            const_spec((1, pack * H0)),                              # b0 tiled
            const_spec((pack * H0, pack * H1)),                      # w1 block-diag
            const_spec((1, pack * H1)),                              # b1 tiled
            const_spec((pack * H1, pack)),                           # w2 block-diag
            pl.BlockSpec(memory_space=pltpu.MemorySpace.SMEM),       # b2 scalar
        ],
        out_specs=pl.BlockSpec((rows, pack), lambda i: (i, 0)),
    )

    out = pl.pallas_call(
        _mlp_kernel,
        out_shape=jax.ShapeDtypeStruct((b_padded // pack, pack), jnp.float32),
        grid_spec=grid_spec,
        compiler_params=pltpu.CompilerParams(
            dimension_semantics=("parallel",),   # megacore sharding on v7x; no-op on v5e/v6e
        ),
    )(x_packed, w0_bd, b0_t, w1_bd, b1_t, w2_bd, b2)

    # Row-major flatten restores exact batch order; slice drops the padded tail.
    return out.reshape(-1)[:B]


def make_params(key, in_features, n_units_l0, n_units_l1):
    """Deterministic synthetic parameter init (PyTorch-like uniform fan-in)."""
    ks = jax.random.split(key, 8)

    def linear(kw, kb, fan_in, fan_out):
        bound = 1.0 / jnp.sqrt(jnp.float32(fan_in))
        w = jax.random.uniform(kw, (fan_in, fan_out), jnp.float32, -bound, bound)
        b = jax.random.uniform(kb, (1, fan_out), jnp.float32, -bound, bound)
        return w, b

    w0, b0 = linear(ks[0], ks[1], in_features, n_units_l0)
    w1, b1 = linear(ks[2], ks[3], n_units_l0, n_units_l1)
    w2, b2 = linear(ks[4], ks[5], n_units_l1, 1)

    return {
        # BatchNorm1d running stats / affine params (eval mode)
        "bn_gamma": jnp.ones((1, in_features), jnp.float32),
        "bn_beta": jnp.zeros((1, in_features), jnp.float32),
        "bn_mean": 0.1 * jax.random.normal(ks[6], (1, in_features), jnp.float32),
        "bn_var": jnp.ones((1, in_features), jnp.float32)
                   + 0.05 * jax.random.uniform(ks[7], (1, in_features), jnp.float32),
        "w0": w0, "b0": b0,
        "w1": w1, "b1": b1,
        "w2": w2, "b2": b2,
    }


if __name__ == "__main__":
    IN_FEATURES = 32
    N_UNITS_L0 = 64
    N_UNITS_L1 = 32
    BATCH = 200        # not a multiple of the tile / pack -> exercises the padded tail

    key = jax.random.PRNGKey(0)
    k_param, k_x = jax.random.split(key)
    params = make_params(k_param, IN_FEATURES, N_UNITS_L0, N_UNITS_L1)
    x = jax.random.normal(k_x, (BATCH, IN_FEATURES), jnp.float32)

    y = jax.block_until_ready(custom_model_forward(x, params))

    # Pure-JAX f32 reference (eval-mode forward of the PyTorch module).
    def ref(x, p):
        h = (x - p["bn_mean"]) / jnp.sqrt(p["bn_var"] + 1e-5) * p["bn_gamma"] + p["bn_beta"]
        h = jnp.maximum(h @ p["w0"] + p["b0"], 0.0)
        h = jnp.maximum(h @ p["w1"] + p["b1"], 0.0)
        return jax.nn.sigmoid(h @ p["w2"] + p["b2"]).reshape(-1)

    y_ref = ref(x, params)
    assert y.shape == (BATCH,)
    # bf16 matmul operands are the only approximation left (sigmoid is exact).
    err = float(jnp.max(jnp.abs(y - y_ref)))
    assert jnp.allclose(y, y_ref, atol=2e-2), err

    print("KERNEL_OK")
</pallas_src>

<mosaic_0001>
module attributes {stable_mosaic.version = 11 : i64} {
  func.func @_mlp_kernel(%arg0: i32, %arg1: memref<32x128xf32, #tpu.memory_space<vmem>>, %arg2: memref<128x256xbf16, #tpu.memory_space<vmem>>, %arg3: memref<1x256xf32, #tpu.memory_space<vmem>>, %arg4: memref<256x128xbf16, #tpu.memory_space<vmem>>, %arg5: memref<1x128xf32, #tpu.memory_space<vmem>>, %arg6: memref<128x4xbf16, #tpu.memory_space<vmem>>, %arg7: memref<1x1xf32, #tpu.memory_space<smem>>, %arg8: memref<32x4xf32, #tpu.memory_space<vmem>>) attributes {dimension_semantics = [#tpu.dimension_semantics<parallel>], iteration_bounds = array<i64: 2>, scalar_prefetch = 0 : i64, scratch_operands = 0 : i64, tpu.core_type = #tpu.core_type<tc>, window_params = [{transform_indices = @transform_0, window_bounds = array<i64: 32, 128>}, {pipeline_mode = #tpu.pipeline_mode<synchronous>, transform_indices = @transform_1, window_bounds = array<i64: 128, 256>}, {pipeline_mode = #tpu.pipeline_mode<synchronous>, transform_indices = @transform_2, window_bounds = array<i64: 1, 256>}, {pipeline_mode = #tpu.pipeline_mode<synchronous>, transform_indices = @transform_3, window_bounds = array<i64: 256, 128>}, {pipeline_mode = #tpu.pipeline_mode<synchronous>, transform_indices = @transform_4, window_bounds = array<i64: 1, 128>}, {pipeline_mode = #tpu.pipeline_mode<synchronous>, transform_indices = @transform_5, window_bounds = array<i64: 128, 4>}, {transform_indices = @transform_6, window_bounds = array<i64: 1, 1>}, {transform_indices = @transform_7, window_bounds = array<i64: 32, 4>}]} {
    %c0 = arith.constant 0 : index
    %c0_0 = arith.constant 0 : index
    %0 = vector.load %arg1[%c0, %c0_0] : memref<32x128xf32, #tpu.memory_space<vmem>>, vector<32x128xf32>
    %1 = arith.truncf %0 : vector<32x128xf32> to vector<32x128xbf16>
    %c0_1 = arith.constant 0 : index
    %c0_2 = arith.constant 0 : index
    %2 = vector.load %arg2[%c0_1, %c0_2] : memref<128x256xbf16, #tpu.memory_space<vmem>>, vector<128x256xbf16>
    %cst = arith.constant dense<0.000000e+00> : vector<32x256xf32>
    %3 = tpu.matmul %1, %2, %cst {dimension_numbers = #tpu.dot_dimension_numbers<[1], [0], [0], [1], [0, 0, 1, 1], [], []>} : vector<32x128xbf16>, vector<128x256xbf16>, vector<32x256xf32> -> vector<32x256xf32>
    %c0_3 = arith.constant 0 : index
    %c0_4 = arith.constant 0 : index
    %4 = vector.load %arg3[%c0_3, %c0_4] : memref<1x256xf32, #tpu.memory_space<vmem>>, vector<1x256xf32>
    %5 = vector.broadcast %4 : vector<1x256xf32> to vector<32x256xf32>
    %6 = arith.addf %3, %5 : vector<32x256xf32>
    %cst_5 = arith.constant 0.000000e+00 : f32
    %7 = vector.broadcast %cst_5 : f32 to vector<32x256xf32>
    %8 = arith.maximumf %6, %7 : vector<32x256xf32>
    %9 = arith.truncf %8 : vector<32x256xf32> to vector<32x256xbf16>
    %c0_6 = arith.constant 0 : index
    %c0_7 = arith.constant 0 : index
    %10 = vector.load %arg4[%c0_6, %c0_7] : memref<256x128xbf16, #tpu.memory_space<vmem>>, vector<256x128xbf16>
    %cst_8 = arith.constant dense<0.000000e+00> : vector<32x128xf32>
    %11 = tpu.matmul %9, %10, %cst_8 {dimension_numbers = #tpu.dot_dimension_numbers<[1], [0], [0], [1], [0, 0, 1, 1], [], []>} : vector<32x256xbf16>, vector<256x128xbf16>, vector<32x128xf32> -> vector<32x128xf32>
    %c0_9 = arith.constant 0 : index
    %c0_10 = arith.constant 0 : index
    %12 = vector.load %arg5[%c0_9, %c0_10] : memref<1x128xf32, #tpu.memory_space<vmem>>, vector<1x128xf32>
    %13 = vector.broadcast %12 : vector<1x128xf32> to vector<32x128xf32>
    %14 = arith.addf %11, %13 : vector<32x128xf32>
    %cst_11 = arith.constant 0.000000e+00 : f32
    %15 = vector.broadcast %cst_11 : f32 to vector<32x128xf32>
    %16 = arith.maximumf %14, %15 : vector<32x128xf32>
    %17 = arith.truncf %16 : vector<32x128xf32> to vector<32x128xbf16>
    %c0_12 = arith.constant 0 : index
    %c0_13 = arith.constant 0 : index
    %18 = vector.load %arg6[%c0_12, %c0_13] : memref<128x4xbf16, #tpu.memory_space<vmem>>, vector<128x4xbf16>
    %cst_14 = arith.constant dense<0.000000e+00> : vector<32x4xf32>
    %19 = tpu.matmul %17, %18, %cst_14 {dimension_numbers = #tpu.dot_dimension_numbers<[1], [0], [0], [1], [0, 0, 1, 1], [], []>} : vector<32x128xbf16>, vector<128x4xbf16>, vector<32x4xf32> -> vector<32x4xf32>
    %c0_15 = arith.constant 0 : index
    %c0_16 = arith.constant 0 : index
    %20 = memref.load %arg7[%c0_15, %c0_16] : memref<1x1xf32, #tpu.memory_space<smem>>
    %21 = vector.broadcast %20 : f32 to vector<32x4xf32>
    %22 = arith.addf %19, %21 : vector<32x4xf32>
    %cst_17 = arith.constant 0.000000e+00 : f32
    %23 = vector.broadcast %cst_17 : f32 to vector<32x4xf32>
    %24 = arith.subf %23, %22 : vector<32x4xf32>
    %25 = math.exp %24 : vector<32x4xf32>
    %cst_18 = arith.constant 1.000000e+00 : f32
    %26 = vector.broadcast %cst_18 : f32 to vector<32x4xf32>
    %27 = arith.addf %26, %25 : vector<32x4xf32>
    %cst_19 = arith.constant 1.000000e+00 : f32
    %28 = vector.broadcast %cst_19 : f32 to vector<32x4xf32>
    %29 = arith.divf %28, %27 : vector<32x4xf32>
    %c0_20 = arith.constant 0 : index
    %c0_21 = arith.constant 0 : index
    %30 = vector.load %arg8[%c0_20, %c0_21] : memref<32x4xf32, #tpu.memory_space<vmem>>, vector<32x4xf32>
    tpu.vector_store %arg8[%c0_20, %c0_21], %29 {strides = array<i32>} : memref<32x4xf32, #tpu.memory_space<vmem>>, vector<32x4xf32>,
    return
  }
  func.func @transform_0(%arg0: i32) -> (i32, i32) {
    %c0_i32 = arith.constant 0 : i32
    %c0_i32_0 = arith.constant 0 : i32
    return %arg0, %c0_i32 : i32, i32
  }
  func.func @transform_1(%arg0: i32) -> (i32, i32) {
    %c0_i32 = arith.constant 0 : i32
    %c0_i32_0 = arith.constant 0 : i32
    %c0_i32_1 = arith.constant 0 : i32
    return %c0_i32, %c0_i32_0 : i32, i32
  }
  func.func @transform_2(%arg0: i32) -> (i32, i32) {
    %c0_i32 = arith.constant 0 : i32
    %c0_i32_0 = arith.constant 0 : i32
    %c0_i32_1 = arith.constant 0 : i32
    return %c0_i32, %c0_i32_0 : i32, i32
  }
  func.func @transform_3(%arg0: i32) -> (i32, i32) {
    %c0_i32 = arith.constant 0 : i32
    %c0_i32_0 = arith.constant 0 : i32
    %c0_i32_1 = arith.constant 0 : i32
    return %c0_i32, %c0_i32_0 : i32, i32
  }
  func.func @transform_4(%arg0: i32) -> (i32, i32) {
    %c0_i32 = arith.constant 0 : i32
    %c0_i32_0 = arith.constant 0 : i32
    %c0_i32_1 = arith.constant 0 : i32
    return %c0_i32, %c0_i32_0 : i32, i32
  }
  func.func @transform_5(%arg0: i32) -> (i32, i32) {
    %c0_i32 = arith.constant 0 : i32
    %c0_i32_0 = arith.constant 0 : i32
    %c0_i32_1 = arith.constant 0 : i32
    return %c0_i32, %c0_i32_0 : i32, i32
  }
  func.func @transform_6(%arg0: i32) -> (i32, i32) {
    %c0_i32 = arith.constant 0 : i32
    %c0_i32_0 = arith.constant 0 : i32
    %c0_i32_1 = arith.constant 0 : i32
    return %c0_i32, %c0_i32_0 : i32, i32
  }
  func.func @transform_7(%arg0: i32) -> (i32, i32) {
    %c0_i32 = arith.constant 0 : i32
    %c0_i32_0 = arith.constant 0 : i32
    return %arg0, %c0_i32 : i32, i32
  }
}

</mosaic_0001>

<bundles_post_ra>
// kernel: tpu_custom_call.1
= control target key start
LH: loop header
LB: loop body
LE: loop exit
PB: predicated region body
PF: predicated region fallthrough
CT: control target
= control target key end

     0   :  { %s1337_s0 = inlined_call_operand.vmem [shape: f32[64,128], index: 0, kind: input, shape index: {}]   ;;  %s1338_s1 = inlined_call_operand.hbm [shape: bf16[128,256], index: 1, kind: input, shape index: {}]   ;;  %s1339_s2 = inlined_call_operand.vmem [shape: f32[1,256], index: 2, kind: input, shape index: {}]   ;;  %s1340_s3 = inlined_call_operand.hbm [shape: bf16[256,128], index: 3, kind: input, shape index: {}]   ;;  %s1341_s4 = inlined_call_operand.vmem [shape: f32[1,128], index: 4, kind: input, shape index: {}]   ;;  %s1342_s5 = inlined_call_operand.vmem [shape: bf16[128,4], index: 5, kind: input, shape index: {}]   ;;  %s1343_s6 = inlined_call_operand.<no memory space> [shape: f32[1,1], index: 6, kind: input, shape index: {}]   ;;  %s1344_s7 = inlined_call_operand.vmem [shape: f32[64,4], index: 7, kind: output, shape index: {}]  }
   0x1   :  { %12 = sst [smem:[#allocation2]] %s1343_s6 }
   0x2   :  { %13 = vsyncpa [#allocation4], 0 }
   0x3   :  { %14 = vsyncpa [#allocation6], 0  ;;  %s1235_s26 = smov 0  }
   0x4 LB: > { %s1185_s27 = smov [#allocation3]   ;;  %s905_s29 = sadd.s32 4294967295, %s1183_s26   ;;  %s1183_s26 = sphi %s1235_s26, %s20_s26  }
   0x5   : > { %s215_s28 = sshll.u32 %s1185_s27, 4  ;;  %p907_p0 = scmp.ge.s32.totalorder %s1183_s26, 1  ;;  %s216_s28 = int_to_ptr.vmem [resolvable:$true] %s215_s28 }
   0x6   : > { %p203_p1 = scmp.lt.s32.totalorder %s1183_s26, 3  ;;  %p1249_p3 = scmp.eq.s32.totalorder %s905_s29, 0 }
   0x7   : > { %s1186_s8 = smov [#allocation5]   ;;  %s1128_s11 = scalar_lea.vmem %s216_s28, 2048 }
   0x8   : > { %p1243_p2 = pnand %p907_p0, %p203_p1  ;;  %s231_s9 = sshll.u32 %s1186_s8, 4  ;;  %s232_s9 = int_to_ptr.vmem [resolvable:$true] %s231_s9 }
   0x9   : > { %p1129_p7 = scmp.ne.s32.totalorder %s216_s28, %s1128_s11  ;;  %p1136_p10 = scmp.lt.s32.totalorder %s216_s28, %s216_s28 }
   0xa   : > { %p1027_p4 = pneg %p1243_p2  ;;  %p1137_p11 = scmp.lt.s32.totalorder %s1128_s11, %s1128_s11 }
   0xc   : > { %p1257_p5 = pnand %p1249_p3, %p1027_p4  ;;  %p1138_p12 = por %p1137_p11, %p1136_p10 }
   0xe   : > { %p1119_p6 = pneg %p1257_p5 }
  0x10   : > { %p1131_p8 = pnand %p1129_p7, %p1119_p6 }
  0x12   : > { %p1132_p9 = pneg %p1131_p8 }
  0x14   : > { %p1139_p13 = pnand %p1138_p12, %p1132_p9 }
  0x16   : > { %1142 = shalt.err (!%p1139_p13)
}
  0x17   : > { %s1187_s12 = smov 128   ;;  %s1188_s13 = smov 8  }
  0x18   : > { %1030 = dma.hbm_to_vmem [thread:$0]  (!%p1257_p5), %s1338_s1, 2048, %s216_s28, [#allocation4], %s1187_s12, %s1187_s12, %s1188_s13  }
  0x19   : > { %s1154_s16 = scalar_lea.vmem %s232_s9, 2048  ;;  %p1162_p7 = scmp.lt.s32.totalorder %s232_s9, %s232_s9 }
  0x1a   : > { %p1155_p0 = scmp.ne.s32.totalorder %s232_s9, %s1154_s16  ;;  %p1163_p8 = scmp.lt.s32.totalorder %s1154_s16, %s1154_s16 }
  0x1c   : > { %p1157_p1 = pnand %p1155_p0, %p1119_p6  ;;  %p1164_p10 = por %p1163_p8, %p1162_p7 }
  0x1e   : > { %p1158_p4 = pneg %p1157_p1 }
  0x20   : > { %p1165_p9 = pnand %p1164_p10, %p1158_p4 }
  0x22   : > { %1168 = shalt.err (!%p1165_p9)
}
  0x23   : > { %s1189_s17 = smov 64   ;;  %s1190_s18 = smov 4  }
  0x24   : > { %1033 = dma.hbm_to_vmem [thread:$0]  (!%p1257_p5), %s1340_s3, 2048, %s232_s9, [#allocation6], %s1189_s17, %s1189_s17, %s1190_s18  }
  0x25   : > { %265 = sbr.rel (%p1243_p2) target bundleno = 737 (0x2e1), region = 48 }
  0x2a   : > { %1174 = dma.done.wait (%p1249_p3), [#allocation4], 2048  }
  0x2b   : > { %1176 = vsyncadd (%p1249_p3), [#allocation4], 4294965248 }
  0x2c   : > { %1178 = dma.done.wait (%p1249_p3), [#allocation6], 2048  }
  0x2d   : > { %1180 = vsyncadd (%p1249_p3), [#allocation6], 4294965248  ;;  %v1191_v0 = vmov 0   ;;  %v1053_v1 = vld [vmem:[#allocation3 + $0x74] ss:$8 sps:$4 sm:$0xff]   ;;  %s914_s21 = sshll.u32 %s905_s29, 2  ;;  %v338_v42 = vlaneseq }
  0x2e   : > { %460 = vmatprep.mubr.bf16.mxu0 %v1191_v0  ;;  %v1055_v2 = vld [vmem:[#allocation3 + $0x70] ss:$8 sps:$4 sm:$0xff]   ;;  %428 = vmatprep.subr.bf16.mxu0 %v1053_v1  ;;  %v1056_v3 = vld [vmem:[#allocation3 + $0x64] ss:$8 sps:$4 sm:$0xff]   ;;  %v1058_v4 = vld [vmem:[#allocation3 + $0x60] ss:$8 sps:$4 sm:$0xff]  }
  0x2f   : > { %429 = vmatpush1.bf16.msra.mxu0 %v1055_v2  ;;  %v1059_v5 = vld [vmem:[#allocation3 + $0x54] ss:$8 sps:$4 sm:$0xff]   ;;  %v1061_v6 = vld [vmem:[#allocation3 + $0x50] ss:$8 sps:$4 sm:$0xff]   ;;  %v1062_v7 = vld [vmem:[#allocation3 + $0x44] ss:$8 sps:$4 sm:$0xff]  }
  0x30   : > { %430 = vmatprep.subr.bf16.mxu0 %v1056_v3  ;;  %v1064_v8 = vld [vmem:[#allocation3 + $0x40] ss:$8 sps:$4 sm:$0xff]   ;;  %v1065_v9 = vld [vmem:[#allocation3 + $0x34] ss:$8 sps:$4 sm:$0xff]   ;;  %p302_p2 = scmp.lt.s32.totalorder %s914_s21, 7  ;;  %v339_v43 = vshrl.u32 %v338_v42, 7 }
  0x31   : > { %v1077_v10 = vld [vmem:[#allocation5 + $0x78] sm:$0xff]   ;;  %v1068_v13 = vld [vmem:[#allocation3 + $0x24] ss:$8 sps:$4 sm:$0xff]   ;;  %v1079_v14 = vld [vmem:[#allocation5 + $0x70] sm:$0xff]   ;;  %vm822_vm0 = vcmask 31744  }
  0x32   : > { %v1067_v11 = vld [vmem:[#allocation3 + $0x30] ss:$8 sps:$4 sm:$0xff]   ;;  %961 = vmatprep.subr.bf16.mxu1 %v1077_v10  ;;  %s1349_s21 = smov (!%p302_p2, %s914_s21), 7  ;;  %v1081_v16 = vld [vmem:[#allocation5 + $0x68] sm:$0xff]   ;;  %v1071_v18 = vld [vmem:[#allocation3 + $0x14] ss:$8 sps:$4 sm:$0xff]  }
  0x33   : > { %431 = vmatpush1.bf16.msra.mxu0 %v1058_v4  ;;  %v1078_v12 = vld [vmem:[#allocation5 + $0x38] sm:$0xff]   ;;  %v1080_v15 = vld [vmem:[#allocation5 + $0x30] sm:$0xff]   ;;  %v1070_v17 = vld [vmem:[#allocation3 + $0x20] ss:$8 sps:$4 sm:$0xff]   ;;  %s915_s22 = sshll.u32 %s1349_s21, 3  ;;  %v344_v44 = vsub.s32 1, %v339_v43 }
  0x34   : > { %432 = vmatprep.subr.bf16.mxu0 %v1059_v5  ;;  %962 = vmatpush3.bf16.msra.mxu1 %v1078_v12  ;;  %v1082_v19 = vld [vmem:[#allocation5 + $0x28] sm:$0xff]   ;;  %v1083_v20 = vld [vmem:[#allocation5 + $0x60] sm:$0xff]   ;;  %v1073_v21 = vld [vmem:[#allocation3 + $0x10] ss:$8 sps:$4 sm:$0xff]   ;;  %s305_s25 = scalar_lea.vmem %s1337_s0, %s915_s22  ;;  %v340_v45 = vsub.s32 0, %v339_v43  ;;  %s311_s29 = scalar_lea.vmem %s1344_s7, %s915_s22 }
  0x35   : > { %963 = vmatprep.subr.bf16.mxu1 %v1079_v14  ;;  %v1084_v22 = vld [vmem:[#allocation5 + $0x20] sm:$0xff]   ;;  %v1085_v24 = vld [vmem:[#allocation5 + $0x58] sm:$0xff]   ;;  %v315_v27 = vld [vmem:[%s305_s25 + $0x8] sm:$0xff] }
  0x36   : > { %v1074_v23 = vld [vmem:[#allocation3 + $0x4] ss:$8 sps:$4 sm:$0xff]   ;;  %v1076_v25 = vld [vmem:[#allocation3] ss:$8 sps:$4 sm:$0xff]   ;;  %v1086_v28 = vld [vmem:[#allocation5 + $0x18] sm:$0xff]  }
  0x37   : > { %433 = vmatpush1.bf16.msra.mxu0 %v1061_v6  ;;  %v314_v26 = vld [vmem:[%s305_s25] sm:$0xff]  ;;  %v316_v30 = vld [vmem:[%s305_s25 + $0x10] sm:$0xff]  ;;  %v317_v31 = vld [vmem:[%s305_s25 + $0x18] sm:$0xff]  ;;  %s699_s25 = sld [smem:[#allocation2]] }
  0x38   : > { %434 = vmatprep.subr.bf16.mxu0 %v1062_v7  ;;  %964 = vmatpush3.bf16.msra.mxu1 %v1080_v15  ;;  %v318_v29 = vpack.c.bf16 %v315_v27, %v314_v26  ;;  %v319_v32 = vpack.c.bf16 %v317_v31, %v316_v30  ;;  %v1087_v33 = vld [vmem:[#allocation5 + $0x50] sm:$0xff]   ;;  %v1089_v35 = vld [vmem:[#allocation5 + $0x48] sm:$0xff]   ;;  %v1091_v37 = vld [vmem:[#allocation5 + $0x40] sm:$0xff]  }
  0x39   : > { %965 = vmatprep.subr.bf16.mxu1 %v1081_v16  ;;  %v1088_v34 = vld [vmem:[#allocation5 + $0x10] sm:$0xff]   ;;  %v1090_v36 = vld [vmem:[#allocation5 + $0x8] sm:$0xff]   ;;  %v1092_v38 = vld [vmem:[#allocation5] sm:$0xff]  }
  0x3a   : > { %v1093_v39 = vld [vmem:[%s1342_s5 + $0x38] sm:$0xff]   ;;  %v1094_v40 = vld [vmem:[%s1342_s5 + $0x30] sm:$0xff]   ;;  %v1095_v41 = vld [vmem:[%s1342_s5 + $0x28] sm:$0xff]  }
  0x3b   : > { %435 = vmatpush1.bf16.msra.mxu0 %v1064_v8  ;;  %v336_v46 = vld [vmem:[%s1339_s2] sm:$0x3]  ;;  %v1097_v14 = vld [vmem:[%s1342_s5 + $0x18] sm:$0xff]   ;;  %v1098_v15 = vld [vmem:[%s1342_s5 + $0x10] sm:$0xff]  }
  0x3c   : > { %436 = vmatprep.subr.bf16.mxu0 %v1065_v9  ;;  %966 = vmatpush3.bf16.msra.mxu1 %v1082_v19  ;;  %v345_v48 = vrot.slane %v336_v46, %v344_v44  ;;  %v341_v49 = vrot.slane %v336_v46, %v340_v45  ;;  %v1099_v16 = vld [vmem:[%s1342_s5 + $0x8] sm:$0xff]  }
  0x3d   : > { %967 = vmatprep.subr.bf16.mxu1 %v1083_v20 }
  0x3f   : > { %437 = vmatpush1.bf16.msra.mxu0 %v1067_v11 }
  0x40   : > { %438 = vmatprep.subr.bf16.mxu0 %v1068_v13  ;;  %968 = vmatpush3.bf16.msra.mxu1 %v1084_v22  ;;  %v1096_v13 = vld [vmem:[%s1342_s5 + $0x20] sm:$0xff]  }
  0x41   : > { %969 = vmatprep.subr.bf16.mxu1 %v1085_v24 }
  0x43   : > { %439 = vmatpush1.bf16.msra.mxu0 %v1070_v17  ;;  %v1100_v17 = vld [vmem:[%s1342_s5] sm:$0xff]  }
  0x44   : > { %440 = vmatprep.subr.bf16.mxu0 %v1071_v18  ;;  %970 = vmatpush3.bf16.msra.mxu1 %v1086_v28 }
  0x45   : > { %971 = vmatprep.subr.bf16.mxu1 %v1087_v33 }
  0x47   : > { %441 = vmatpush1.bf16.msra.mxu0 %v1073_v21  ;;  %v934_v21 = vld [vmem:[%s1341_s4] ss:$0 sm:$0xff] }
  0x48   : > { %442 = vmatprep.subr.bf16.mxu0 %v1074_v23  ;;  %972 = vmatpush3.bf16.msra.mxu1 %v1088_v34 }
  0x49   : > { %973 = vmatprep.subr.bf16.mxu1 %v1089_v35 }
  0x4b   : > { %443 = vmatpush1.bf16.msra.mxu0 %v1076_v25 }
  0x4c   : > { %974 = vmatpush3.bf16.msra.mxu1 %v1090_v36  ;;  %999 = vmatprep.subr.bf16.mxu0 %v1093_v39 }
  0x4d   : > { %975 = vmatprep.subr.bf16.mxu1 %v1091_v37 }
  0x4e   : > { %461 = vmatmul.mubr.bf16.vlgmr.msra.gmra.mxu0 %v318_v29 }
  0x4f   : > { %470 = vmatprep.mubr.bf16.mxu0 %v1191_v0  ;;  %1000 = vmatpush3.bf16.msra.mxu0 %v1093_v39 }
  0x50   : > { %976 = vmatpush3.bf16.msra.mxu1 %v1092_v38  ;;  %1001 = vmatprep.subr.bf16.mxu0 %v1094_v40 }
  0x53   : > { %1002 = vmatpush3.bf16.msra.mxu0 %v1094_v40 }
  0x54   : > { %1003 = vmatprep.subr.bf16.mxu0 %v1095_v41 }
  0x56   : > { %471 = vmatmul.mubr.bf16.gmra.mxu0 %v319_v32 }
  0x57   : > { %1004 = vmatpush3.bf16.msra.mxu0 %v1095_v41  ;;  %v700_v41 = vstv %s699_s25 }
  0x58   : > { %1005 = vmatprep.subr.bf16.mxu0 %v1096_v13 }
  0x5b   : > { %1006 = vmatpush3.bf16.msra.mxu0 %v1096_v13 }
  0x5c   : > { %1007 = vmatprep.subr.bf16.mxu0 %v1097_v14 }
  0x5f   : > { %1008 = vmatpush3.bf16.msra.mxu0 %v1097_v14 }
  0x60   : > { %1009 = vmatprep.subr.bf16.mxu0 %v1098_v15 }
  0x63   : > { %1010 = vmatpush3.bf16.msra.mxu0 %v1098_v15 }
  0x64   : > { %1011 = vmatprep.subr.bf16.mxu0 %v1099_v16 }
  0x67   : > { %1012 = vmatpush3.bf16.msra.mxu0 %v1099_v16 }
  0x68   : > { %1013 = vmatprep.subr.bf16.mxu0 %v1100_v17 }
  0x6b   : > { %1014 = vmatpush3.bf16.msra.mxu0 %v1100_v17 }
 0x10e   : > { %v462_v47 = vpop.f32.mrf.mxu0 }
 0x10f   : > { %v463_v54 = vadd.f32 %v462_v47, %v341_v49 }
 0x110   : > { %v464_v50 = vpop.f32.mrf.mxu0 }
 0x111   : > { %v465_v52 = vadd.f32 %v464_v50, %v345_v48  ;;  %v481_v61 = vmax.f32 %v463_v54, 0.0 }
 0x112   : > { %v466_v51 = vpop.f32.mrf.mxu0 }
 0x113   : > { %v467_v53 = vadd.f32 %v466_v51, %v341_v49  ;;  %v482_v59 = vmax.f32 %v465_v52, 0.0 }
 0x114   : > { %v468_v55 = vpop.f32.mrf.mxu0 }
 0x115   : > { %v469_v56 = vadd.f32 %v468_v55, %v345_v48  ;;  %v483_v57 = vmax.f32 %v467_v53, 0.0 }
 0x116   : > { %v472_v58 = vpop.f32.mrf.mxu0 }
 0x117   : > { %v484_v60 = vmax.f32 %v469_v56, 0.0  ;;  %v489_v0 = vpack.c.bf16 %v483_v57, %v481_v61  ;;  %v473_v4 = vadd.f32 %v472_v58, %v341_v49 }
 0x118   : > { %v474_v62 = vpop.f32.mrf.mxu0 }
 0x119   : > { %v490_v63 = vpack.c.bf16 %v484_v60, %v482_v59  ;;  %v475_v2 = vadd.f32 %v474_v62, %v345_v48  ;;  %v485_v10 = vmax.f32 %v473_v4, 0.0 }
 0x11a   : > { %v476_v1 = vpop.f32.mrf.mxu0 }
 0x11b   : > { %v477_v3 = vadd.f32 %v476_v1, %v341_v49  ;;  %660 = vmatprep.mubr.bf16.mxu1 %v490_v63  ;;  %v486_v8 = vmax.f32 %v475_v2, 0.0 }
 0x11c   : > { %v478_v5 = vpop.f32.mrf.mxu0  ;;  %661 = vmatmul.mubr.bf16.vlgmr.msra.gmra.mxu1 %v489_v0 }
 0x11d   : > { %v479_v6 = vadd.f32 %v478_v5, %v345_v48  ;;  %v487_v7 = vmax.f32 %v477_v3, 0.0 }
 0x11f   : > { %v488_v9 = vmax.f32 %v479_v6, 0.0  ;;  %v491_v12 = vpack.c.bf16 %v487_v7, %v485_v10 }
 0x121   : > { %v492_v11 = vpack.c.bf16 %v488_v9, %v486_v8 }
 0x123   : > { %668 = vmatprep.mubr.bf16.mxu1 %v492_v11 }
 0x124   : > { %669 = vmatmul.mubr.bf16.gmra.mxu1 %v491_v12 }
 0x1dc   : > { %v977_v18 = vpop.f32.mrf.mxu1 }
 0x1de   : > { %v978_v19 = vpop.f32.mrf.mxu1 }
 0x1df   : > { %v979_v20 = vadd.f32 %v978_v19, %v977_v18 }
 0x1e0   : > { %v980_v22 = vpop.f32.mrf.mxu1 }
 0x1e1   : > { %v663_v24 = vadd.f32 %v979_v20, %v934_v21 }
 0x1e2   : > { %v981_v23 = vpop.f32.mrf.mxu1 }
 0x1e3   : > { %v982_v25 = vadd.f32 %v981_v23, %v980_v22  ;;  %v677_v29 = vmax.f32 %v663_v24, 0.0 }
 0x1e4   : > { %v983_v26 = vpop.f32.mrf.mxu1 }
 0x1e5   : > { %v666_v27 = vadd.f32 %v982_v25, %v934_v21 }
 0x1e6   : > { %v984_v28 = vpop.f32.mrf.mxu1 }
 0x1e7   : > { %v678_v30 = vmax.f32 %v666_v27, 0.0  ;;  %v985_v31 = vadd.f32 %v984_v28, %v983_v26 }
 0x1e8   : > { %v986_v32 = vpop.f32.mrf.mxu1 }
 0x1e9   : > { %v681_v33 = vpack.c.bf16 %v678_v30, %v677_v29  ;;  %v671_v35 = vadd.f32 %v985_v31, %v934_v21 }
 0x1ea   : > { %v987_v34 = vpop.f32.mrf.mxu1 }
 0x1eb   : > { %v988_v36 = vadd.f32 %v987_v34, %v986_v32  ;;  %1015 = vmatprep.mubr.bf16.mxu0 %v681_v33  ;;  %v679_v38 = vmax.f32 %v671_v35, 0.0 }
 0x1ed   : > { %v674_v37 = vadd.f32 %v988_v36, %v934_v21 }
 0x1ef   : > { %v680_v39 = vmax.f32 %v674_v37, 0.0 }
 0x1f1   : > { %v682_v40 = vpack.c.bf16 %v680_v39, %v679_v38 }
 0x1f3   : > { %1016 = vmatmul.mubr.bf16.vlgmr.msra.gmra.mxu0 %v682_v40 }
 0x2b3   : > { %v1017_v42 = vpop.f32.mrf.mxu0 }
 0x2b4   : > { %v792_v43 = vadd.f32 %v1017_v42, %v700_v41 }
 0x2b5   : > { %v783_v44 = vpop.f32.mrf.mxu0 }
 0x2b6   : > { %v800_v45 = vsub.f32 0.0, %v792_v43  ;;  %v784_v46 = vadd.f32 %v783_v44, %v700_v41 }
 0x2b7   : > { %v1018_v47 = vpop.f32.mrf.mxu0 }
 0x2b8   : > { %v798_v48 = vsub.f32 0.0, %v784_v46  ;;  %v795_v49 = vadd.f32 %v1018_v47, %v700_v41  ;;  %v806_v50 = vmul.f32 1.442695, %v800_v45 }
 0x2b9   : > { %v786_v51 = vpop.f32.mrf.mxu0 }
 0x2ba   : > { %v802_v52 = vmul.f32 1.442695, %v798_v48  ;;  %v801_v53 = vsub.f32 0.0, %v795_v49  ;;  %v787_v54 = vadd.f32 %v786_v51, %v700_v41 }
 0x2bc   : > { %1101 = vpow2.f32 %v802_v52  ;;  %v808_v55 = vmul.f32 1.442695, %v801_v53  ;;  %v799_v56 = vsub.f32 0.0, %v787_v54 }
 0x2bd   : > { %1103 = vpow2.f32 %v806_v50 }
 0x2be   : > { %1105 = vpow2.f32 %v808_v55  ;;  %v804_v57 = vmul.f32 1.442695, %v799_v56 }
 0x2c0   : > { %1107 = vpow2.f32 %v804_v57 }
 0x2c9   : > { %v1102_v58 = vpop.eup %1101 }
 0x2ca   : > { %v1104_v59 = vpop.eup %1103  ;;  %v810_v60 = vadd.f32 1.0, %v1102_v58 }
 0x2cb   : > { %v1106_v61 = vpop.eup %1105  ;;  %v812_v63 = vadd.f32 1.0, %v1104_v59 }
 0x2cc   : > { %1109 = vrcp.f32 %v810_v60  ;;  %v813_v0 = vadd.f32 1.0, %v1106_v61 }
 0x2cd   : > { %v1108_v62 = vpop.eup %1107 }
 0x2ce   : > { %v811_v1 = vadd.f32 1.0, %v1108_v62 }
 0x2d0   : > { %1111 = vrcp.f32 %v811_v1 }
 0x2d1   : > { %1113 = vrcp.f32 %v812_v63 }
 0x2d2   : > { %1115 = vrcp.f32 %v813_v0 }
 0x2d9   : > { %v1110_v2 = vpop.eup %1109 }
 0x2da   : > { %823 = vst.msk [vmem:[%s311_s29] sm:$0xff] %vm822_vm0, %v1110_v2 }
 0x2dd   : > { %v1112_v3 = vpop.eup %1111 }
 0x2de   : > { %v1114_v4 = vpop.eup %1113  ;;  %824 = vst.msk [vmem:[%s311_s29 + $0x8] sm:$0xff] %vm822_vm0, %v1112_v3 }
 0x2df   : > { %v1116_v5 = vpop.eup %1115  ;;  %825 = vst.msk [vmem:[%s311_s29 + $0x10] sm:$0xff] %vm822_vm0, %v1114_v4 }
 0x2e0   : > { %826 = vst.msk [vmem:[%s311_s29 + $0x18] sm:$0xff] %vm822_vm0, %v1116_v5 }
 0x2e1 PF: > { %s20_s26 = sadd.s32 1, %s1183_s26  }
 0x2e2   : > { %p17_p3 = scmp.ge.s32.totalorder %s20_s26, 4  }
 0x2e4   :  { %19 = sbr.rel (!%p17_p3) target bundleno = 4 (0x4), region = 87 }
 0x2e9   :  { %849 = vsyncpa [#allocation4], 1 }
 0x2ea   :  { %851 = vsyncpa [#allocation4 + $0x1], 1 }
 0x2eb   :  { %852 = vsyncpa [#allocation6], 1 }

</bundles_post_ra>
